<compile_context>
chip_gen: v5e
topology: v5e:2x2
jax: 0.10.0
libtpu: 0.0.40
codegen_flags: <defaults>
</compile_context>

<pallas_src>
import functools

import jax
import jax.numpy as jnp
from jax.experimental import pallas as pl
from jax.experimental.pallas import tpu as pltpu

_LANE = 128    # lane / MXU alignment (K and N)
_SUBLANE = 8   # sublane alignment (M)


def _round_up(x: int, m: int) -> int:
    return ((x + m - 1) // m) * m


def _pick_tile(dim_aligned: int, preferred: int, align: int) -> int:
    """Largest multiple of `align` that divides `dim_aligned` and is <= preferred."""
    units = dim_aligned // align
    pref_units = max(1, min(units, preferred // align))
    for d in range(pref_units, 0, -1):
        if units % d == 0:
            return d * align
    return align


def linear_kernel(x_ref, w_ref, b_ref, o_ref, acc_ref):
    """One (tm, tn) output tile; K reduction runs over grid axis 2."""
    k = pl.program_id(2)
    prod = jnp.dot(x_ref[...], w_ref[...], preferred_element_type=jnp.float32)

    @pl.when(k == 0)
    def _init():
        # Direct write: avoids a zero-init + read-modify-write of the tile.
        acc_ref[...] = prod

    @pl.when(k > 0)
    def _accumulate():
        acc_ref[...] += prod

    @pl.when(k == pl.num_programs(2) - 1)
    def _finalize():
        # f32 epilogue (bias add + cast) — safe on v5e (no bf16 VPU) too.
        o_ref[...] = (acc_ref[...] + b_ref[...].astype(jnp.float32)).astype(
            o_ref.dtype
        )


@functools.partial(
    jax.jit, static_argnames=("out_dim", "tm", "tn", "tk", "use_bf16")
)
def linear_forward(
    x,
    w_t,
    b,
    *,
    out_dim=None,
    tm: int = 512,
    tn: int = 512,
    tk: int = 1024,
    use_bf16: bool = False,
):
    """y = x @ w_t + b.

    x:   [B, in_dim]
    w_t: [in_dim(_padded), out_dim(_padded)]  pre-transposed nn.Linear weight,
         ideally pre-padded once by make_params (128-aligned K and N).
    b:   [1, w_t.shape[1]]
    out_dim: logical output width (defaults to w_t.shape[1]).
    """
    B, K = x.shape
    Kw, Nw = w_t.shape
    assert b.ndim == 2 and b.shape == (1, Nw), (
        "bias must have shape (1, w_t.shape[1])", b.shape, Nw)
    N = Nw if out_dim is None else out_dim
    assert N <= Nw
    out_dtype = x.dtype

    # Hardware-aligned problem dims (computed BEFORE tile choice).
    Mp = _round_up(B, _SUBLANE)
    Kp = _round_up(K, _LANE)
    Np = _round_up(Nw, _LANE)
    assert K <= Kw <= Kp, (K, Kw, Kp)

    # Fallback pad of weight/bias only if the caller did NOT pre-pad them
    # (make_params does this once, so the hot path skips this HBM round-trip).
    if (Kw, Nw) != (Kp, Np):
        w_t = jnp.pad(w_t, ((0, Kp - Kw), (0, Np - Nw)))
        b = jnp.pad(b, ((0, 0), (0, Np - Nw)))

    # Flag-gated bf16 MXU operands (f32 accumulate kept). Off by default for
    # bit-parity with the f32 PyTorch reference.
    if use_bf16:
        x = x.astype(jnp.bfloat16)
        if w_t.dtype != jnp.bfloat16:
            # TODO(synk): for production, create/store weights in bf16 in
            # make_params so this per-call cast is hoisted too.
            w_t = w_t.astype(jnp.bfloat16)

    # Activation padding (zero K padding contributes nothing to the dot;
    # padded M rows are sliced off at the end).
    if (B, K) != (Mp, Kp):
        x = jnp.pad(x, ((0, Mp - B), (0, Kp - K)))

    # Tile sizes: multiples of 8/128 that DIVIDE the aligned dims (no
    # tile-induced padding), no larger than the requested preference.
    tm = _pick_tile(Mp, max(_SUBLANE, tm), _SUBLANE)
    tn = _pick_tile(Np, max(_LANE, tn), _LANE)
    tk = _pick_tile(Kp, max(_LANE, tk), _LANE)

    # v7x megacore: guarantee >=2 parallel (M,N) output blocks when possible
    # so both TensorCores get work. Prefer splitting N (keeps lane-dense
    # stores), fall back to M.
    if (Mp // tm) * (Np // tn) < 2:
        if Np // _LANE >= 2:
            tn = _pick_tile(Np, Np // 2, _LANE)
        elif Mp // _SUBLANE >= 2:
            tm = _pick_tile(Mp, Mp // 2, _SUBLANE)

    grid = (Mp // tm, Np // tn, Kp // tk)

    in_itemsize = jnp.dtype(x.dtype).itemsize
    w_itemsize = jnp.dtype(w_t.dtype).itemsize
    out_itemsize = jnp.dtype(out_dtype).itemsize

    # Double-buffered input tiles + double-buffered output tile + f32 acc.
    footprint = (
        2 * (tm * tk * in_itemsize + tk * tn * w_itemsize)
        + 2 * tm * tn * out_itemsize
        + tm * tn * 4
    )
    # Cap at ~48 MiB so the budget stays safe on v7x's 64 MiB per-TC VMEM;
    # defaults use ~11 MiB, well under every generation's scoped limit.
    vmem_limit = min(48 * 1024 * 1024,
                     max(32 * 1024 * 1024, int(footprint * 5 // 4)))

    cost = pl.CostEstimate(
        flops=2 * Mp * Np * Kp,
        bytes_accessed=(
            Mp * Kp * in_itemsize * (Np // tn)      # x read once per N-tile
            + Kp * Np * w_itemsize * (Mp // tm)     # W read once per M-tile
            + Mp * Np * out_itemsize                # output written once
        ),
        transcendentals=0,
    )

    out = pl.pallas_call(
        linear_kernel,
        out_shape=jax.ShapeDtypeStruct((Mp, Np), out_dtype),
        grid_spec=pltpu.PrefetchScalarGridSpec(
            num_scalar_prefetch=0,
            grid=grid,
            in_specs=[
                # x tile varies with (M, K) grid axes.
                pl.BlockSpec((tm, tk), lambda i, j, k: (i, k)),
                # weight tile varies with (K, N) grid axes.
                pl.BlockSpec((tk, tn), lambda i, j, k: (k, j)),
                # bias tile depends only on the N axis (re-used across K).
                pl.BlockSpec((1, tn), lambda i, j, k: (0, j)),
            ],
            out_specs=pl.BlockSpec((tm, tn), lambda i, j, k: (i, j)),
            scratch_shapes=[pltpu.VMEM((tm, tn), jnp.float32)],
        ),
        compiler_params=pltpu.CompilerParams(
            # M, N shard across TensorCores; K is the serial reduction axis.
            dimension_semantics=("parallel", "parallel", "arbitrary"),
            vmem_limit_bytes=vmem_limit,
        ),
        cost_estimate=cost,
    )(x, w_t, b)

    if (Mp, Np) != (B, N):
        out = out[:B, :N]
    return out


def make_params(key, in_dim, out_dim, dtype=jnp.float32):
    """xavier_normal_ on nn.Linear.weight ([out_dim, in_dim]); bias = 0.

    The weight is pre-transposed to [in_dim, out_dim] and pre-padded ONCE to
    the 128-aligned (Kp, Np), so the per-call hot path never re-pads the full
    weight in HBM.
    """
    std = (2.0 / (in_dim + out_dim)) ** 0.5
    w = jax.random.normal(key, (out_dim, in_dim), dtype=jnp.float32) * std
    w_t = w.T.astype(dtype)
    b = jnp.zeros((1, out_dim), dtype=dtype)
    Kp = _round_up(in_dim, _LANE)
    Np = _round_up(out_dim, _LANE)
    w_t = jnp.pad(w_t, ((0, Kp - in_dim), (0, Np - out_dim)))
    b = jnp.pad(b, ((0, 0), (0, Np - out_dim)))
    return w_t, b


if __name__ == "__main__":
    key = jax.random.PRNGKey(0)
    k1, k2, k3, k4 = jax.random.split(key, 4)

    # --- primary small example (matches the module's forward, f32 parity) ---
    batch, in_dim, out_dim = 8, 32, 16
    x = jax.random.normal(k1, (batch, in_dim), dtype=jnp.float32)
    w_t, b = make_params(k2, in_dim, out_dim)

    y = linear_forward(x, w_t, b, out_dim=out_dim)
    jax.block_until_ready(y)

    y_ref = x @ w_t[:in_dim, :out_dim] + b[:, :out_dim]
    assert y.shape == (batch, out_dim)
    assert jnp.allclose(y, y_ref, atol=1e-5, rtol=1e-5)

    # --- secondary check: multi-tile grid on all 3 axes, K accumulation,
    #     bias-once finalize, x K-padding, and pre-padded weights ---
    b2, i2, o2 = 24, 320, 272
    x2 = jax.random.normal(k3, (b2, i2), dtype=jnp.float32)
    w_t2, bias2 = make_params(k4, i2, o2)

    y2 = linear_forward(x2, w_t2, bias2, out_dim=o2, tm=8, tn=128, tk=128)
    jax.block_until_ready(y2)

    y2_ref = x2 @ w_t2[:i2, :o2] + bias2[:, :o2]
    assert y2.shape == (b2, o2)
    assert jnp.allclose(y2, y2_ref, atol=1e-4, rtol=1e-4)

    # --- flag-gated bf16 MXU operand path (looser tolerance) ---
    y3 = linear_forward(x2, w_t2, bias2, out_dim=o2, use_bf16=True)
    jax.block_until_ready(y3)
    assert y3.shape == (b2, o2)
    assert jnp.allclose(y3.astype(jnp.float32), y2_ref, atol=1.5e-1, rtol=5e-2)

    print("KERNEL_OK")
</pallas_src>

<mosaic_0001>
module attributes {stable_mosaic.version = 11 : i64} {
  func.func @linear_kernel(%arg0: i32, %arg1: i32, %arg2: i32, %arg3: memref<8x128xf32, #tpu.memory_space<vmem>>, %arg4: memref<128x128xf32, #tpu.memory_space<vmem>>, %arg5: memref<1x128xf32, #tpu.memory_space<vmem>>, %arg6: memref<8x128xf32, #tpu.memory_space<vmem>>, %arg7: memref<8x128xf32, #tpu.memory_space<vmem>>) attributes {dimension_semantics = [#tpu.dimension_semantics<parallel>, #tpu.dimension_semantics<parallel>, #tpu.dimension_semantics<arbitrary>], iteration_bounds = array<i64: 1, 1, 1>, scalar_prefetch = 0 : i64, scratch_operands = 1 : i64, tpu.core_type = #tpu.core_type<tc>, window_params = [{transform_indices = @transform_0, window_bounds = array<i64: 8, 128>}, {transform_indices = @transform_1, window_bounds = array<i64: 128, 128>}, {transform_indices = @transform_2, window_bounds = array<i64: 1, 128>}, {transform_indices = @transform_3, window_bounds = array<i64: 8, 128>}]} {
    %c0 = arith.constant 0 : index
    %c0_0 = arith.constant 0 : index
    %0 = vector.load %arg3[%c0, %c0_0] : memref<8x128xf32, #tpu.memory_space<vmem>>, vector<8x128xf32>
    %c0_1 = arith.constant 0 : index
    %c0_2 = arith.constant 0 : index
    %1 = vector.load %arg4[%c0_1, %c0_2] : memref<128x128xf32, #tpu.memory_space<vmem>>, vector<128x128xf32>
    %cst = arith.constant dense<0.000000e+00> : vector<8x128xf32>
    %2 = tpu.matmul %0, %1, %cst {dimension_numbers = #tpu.dot_dimension_numbers<[1], [0], [0], [1], [0, 0, 1, 1], [], []>} : vector<8x128xf32>, vector<128x128xf32>, vector<8x128xf32> -> vector<8x128xf32>
    %c0_i32 = arith.constant 0 : i32
    %3 = arith.cmpi eq, %arg2, %c0_i32 : i32
    %4 = arith.extui %3 : i1 to i32
    %c0_i32_3 = arith.constant 0 : i32
    %5 = arith.cmpi ne, %4, %c0_i32_3 : i32
    scf.if %5 {
      %c0_8 = arith.constant 0 : index
      %c0_9 = arith.constant 0 : index
      %12 = vector.load %arg7[%c0_8, %c0_9] : memref<8x128xf32, #tpu.memory_space<vmem>>, vector<8x128xf32>
      tpu.vector_store %arg7[%c0_8, %c0_9], %2 {strides = array<i32>} : memref<8x128xf32, #tpu.memory_space<vmem>>, vector<8x128xf32>,
    } else {
    }
    %c0_i32_4 = arith.constant 0 : i32
    %6 = arith.cmpi sgt, %arg2, %c0_i32_4 : i32
    %7 = arith.extui %6 : i1 to i32
    %c0_i32_5 = arith.constant 0 : i32
    %8 = arith.cmpi ne, %7, %c0_i32_5 : i32
    scf.if %8 {
      %c0_8 = arith.constant 0 : index
      %c0_9 = arith.constant 0 : index
      %12 = vector.load %arg7[%c0_8, %c0_9] : memref<8x128xf32, #tpu.memory_space<vmem>>, vector<8x128xf32>
      %13 = arith.addf %12, %2 : vector<8x128xf32>
      %c0_10 = arith.constant 0 : index
      %c0_11 = arith.constant 0 : index
      %14 = vector.load %arg7[%c0_10, %c0_11] : memref<8x128xf32, #tpu.memory_space<vmem>>, vector<8x128xf32>
      tpu.vector_store %arg7[%c0_10, %c0_11], %13 {strides = array<i32>} : memref<8x128xf32, #tpu.memory_space<vmem>>, vector<8x128xf32>,
    } else {
    }
    %c0_i32_6 = arith.constant 0 : i32
    %9 = arith.cmpi eq, %arg2, %c0_i32_6 : i32
    %10 = arith.extui %9 : i1 to i32
    %c0_i32_7 = arith.constant 0 : i32
    %11 = arith.cmpi ne, %10, %c0_i32_7 : i32
    scf.if %11 {
      %c0_8 = arith.constant 0 : index
      %c0_9 = arith.constant 0 : index
      %12 = vector.load %arg7[%c0_8, %c0_9] : memref<8x128xf32, #tpu.memory_space<vmem>>, vector<8x128xf32>
      %c0_10 = arith.constant 0 : index
      %c0_11 = arith.constant 0 : index
      %13 = vector.load %arg5[%c0_10, %c0_11] : memref<1x128xf32, #tpu.memory_space<vmem>>, vector<1x128xf32>
      %14 = vector.broadcast %13 : vector<1x128xf32> to vector<8x128xf32>
      %15 = arith.addf %12, %14 : vector<8x128xf32>
      %c0_12 = arith.constant 0 : index
      %c0_13 = arith.constant 0 : index
      %16 = vector.load %arg6[%c0_12, %c0_13] : memref<8x128xf32, #tpu.memory_space<vmem>>, vector<8x128xf32>
      tpu.vector_store %arg6[%c0_12, %c0_13], %15 {strides = array<i32>} : memref<8x128xf32, #tpu.memory_space<vmem>>, vector<8x128xf32>,
    } else {
    }
    return
  }
  func.func @transform_0(%arg0: i32, %arg1: i32, %arg2: i32) -> (i32, i32) {
    %c0_i32 = arith.constant 0 : i32
    return %arg0, %arg2 : i32, i32
  }
  func.func @transform_1(%arg0: i32, %arg1: i32, %arg2: i32) -> (i32, i32) {
    %c0_i32 = arith.constant 0 : i32
    return %arg2, %arg1 : i32, i32
  }
  func.func @transform_2(%arg0: i32, %arg1: i32, %arg2: i32) -> (i32, i32) {
    %c0_i32 = arith.constant 0 : i32
    %c0_i32_0 = arith.constant 0 : i32
    return %c0_i32, %arg1 : i32, i32
  }
  func.func @transform_3(%arg0: i32, %arg1: i32, %arg2: i32) -> (i32, i32) {
    %c0_i32 = arith.constant 0 : i32
    return %arg0, %arg1 : i32, i32
  }
}

</mosaic_0001>

<bundles_post_ra>
// kernel: linear_forward.1
= control target key start
LH: loop header
LB: loop body
LE: loop exit
PB: predicated region body
PF: predicated region fallthrough
CT: control target
= control target key end

     0   :  { %8 = vsyncpa [#allocation4], 0  ;;  %s200_s0 = inlined_call_operand.vmem [shape: f32[8,128], index: 0, kind: input, shape index: {}]   ;;  %s201_s1 = inlined_call_operand.hbm [shape: f32[128,128], index: 1, kind: input, shape index: {}]   ;;  %s202_s2 = inlined_call_operand.vmem [shape: f32[1,128], index: 2, kind: input, shape index: {}]   ;;  %s203_s3 = inlined_call_operand.hbm [shape: f32[8,128], index: 3, kind: output, shape index: {}]  }
   0x1   :  { %9 = vsyncpa [#allocation5], 0  ;;  %s16_s14 = sshll.u32 %s201_s1, 4  ;;  %s164_s15 = smov [#allocation3]   ;;  %s17_s14 = int_to_ptr.hbm [resolvable:$true] %s16_s14 }
   0x2   :  { %s18_s16 = sshll.u32 %s164_s15, 4  ;;  %s165_s17 = smov 128   ;;  %s19_s16 = int_to_ptr.vmem [resolvable:$true] %s18_s16 }
   0x3   :  { %s166_s18 = smov 8  }
   0x4   :  { %24 = dma.hbm_to_vmem [thread:$0]  %s17_s14, 2048, %s19_s16, [#allocation4], %s165_s17, %s165_s17, %s166_s18  }
   0x5   :  { %160 = dma.done.wait [#allocation4], 2048  }
   0x6   :  { %161 = vsyncadd [#allocation4], 4294965248  ;;  %v47_v0 = vld [vmem:[#allocation3 + $0x78] sm:$0xff]  ;;  %v46_v1 = vld [vmem:[#allocation3 + $0x70] sm:$0xff]  ;;  %s167_s22 = smov [#allocation6]   ;;  %s97_s26 = sshll.u32 %s203_s3, 4  ;;  %s98_s26 = int_to_ptr.hbm [resolvable:$true] %s97_s26 }
   0x7   :  { %48 = vmatpush.msra.mxu0 %v47_v0  ;;  %v45_v2 = vld [vmem:[#allocation3 + $0x68] sm:$0xff]  ;;  %v44_v3 = vld [vmem:[#allocation3 + $0x60] sm:$0xff]  ;;  %v43_v4 = vld [vmem:[#allocation3 + $0x58] sm:$0xff]  ;;  %s95_s23 = sshll.u32 %s167_s22, 4  ;;  %s96_s23 = int_to_ptr.vmem [resolvable:$true] %s95_s23 }
   0x8   :  { %v42_v5 = vld [vmem:[#allocation3 + $0x50] sm:$0xff]  ;;  %v41_v6 = vld [vmem:[#allocation3 + $0x48] sm:$0xff]  ;;  %v40_v7 = vld [vmem:[#allocation3 + $0x40] sm:$0xff] }
   0x9   :  { %49 = vmatpush.msra.mxu0 %v46_v1  ;;  %v39_v8 = vld [vmem:[#allocation3 + $0x38] sm:$0xff]  ;;  %v38_v9 = vld [vmem:[#allocation3 + $0x30] sm:$0xff]  ;;  %v37_v10 = vld [vmem:[#allocation3 + $0x28] sm:$0xff] }
   0xa   :  { %v36_v11 = vld [vmem:[#allocation3 + $0x20] sm:$0xff]  ;;  %v35_v12 = vld [vmem:[#allocation3 + $0x18] sm:$0xff]  ;;  %v34_v13 = vld [vmem:[#allocation3 + $0x10] sm:$0xff] }
   0xb   :  { %50 = vmatpush.msra.mxu0 %v45_v2  ;;  %v33_v14 = vld [vmem:[#allocation3 + $0x8] sm:$0xff]  ;;  %v32_v15 = vld [vmem:[#allocation3] sm:$0xff] }
   0xc   :  { %v31_v16 = vld [vmem:[%s200_s0] sm:$0xff] }
   0xd   :  { %51 = vmatpush.msra.mxu0 %v44_v3  ;;  %v111_v17 = vld [vmem:[%s202_s2] ss:$0 sm:$0xff] }
   0xf   :  { %52 = vmatpush.msra.mxu0 %v43_v4 }
  0x11   :  { %53 = vmatpush.msra.mxu0 %v42_v5 }
  0x13   :  { %54 = vmatpush.msra.mxu0 %v41_v6 }
  0x15   :  { %55 = vmatpush.msra.mxu0 %v40_v7 }
  0x17   :  { %56 = vmatpush.msra.mxu0 %v39_v8 }
  0x19   :  { %57 = vmatpush.msra.mxu0 %v38_v9 }
  0x1b   :  { %58 = vmatpush.msra.mxu0 %v37_v10 }
  0x1d   :  { %59 = vmatpush.msra.mxu0 %v36_v11 }
  0x1f   :  { %60 = vmatpush.msra.mxu0 %v35_v12 }
  0x21   :  { %61 = vmatpush.msra.mxu0 %v34_v13 }
  0x23   :  { %62 = vmatpush.msra.mxu0 %v33_v14 }
  0x25   :  { %63 = vmatpush.msra.mxu0 %v32_v15 }
  0x26   :  { %64 = vmatmul.f32.vlgmr.msra.gmra.mxu0 %v31_v16 }
  0xa3   :  { %v65_v18 = vpop.f32.mrf.mxu0 }
  0xa4   :  { %v88_v19 = vadd.f32 %v111_v17, %v65_v18 }
  0xa6   :  { %89 = vst [vmem:[#allocation6] sm:$0xff] %v88_v19 }
  0xa7   :  { %100 = dma.vmem_to_hbm [thread:$0]  %s96_s23, 128, %s98_s26, [#allocation5]  }
  0xa8   :  { %162 = dma.done.wait [#allocation5], 128  }
  0xa9   :  { %163 = vsyncadd [#allocation5], 4294967168 }
  0xaa   :  { %105 = vsyncpa [#allocation4], 1 }
  0xab   :  { %106 = vsyncpa [#allocation5], 1 }

</bundles_post_ra>
